<compile_context>
chip_gen: v7x
topology: tpu7x:2x2x1
jax: 0.10.0
libtpu: 0.0.40
codegen_flags: <defaults>
</compile_context>

<pallas_src>
import jax
import jax.numpy as jnp
from jax.experimental import pallas as pl
from jax.experimental.pallas import tpu as pltpu


# -----------------------------------------------------------------------------
# Kernel 1: batch_rodrigues (axis-angle -> rotation matrix), quaternion form.
# Input  theta_t : (3, Npad)  (transposed axis-angle vectors, lane-padded)
# Output rot_t   : (9, Npad)  (row-major flattened 3x3 per column)
# -----------------------------------------------------------------------------
def _rodrigues_kernel(theta_ref, out_ref):
    theta = theta_ref[...].astype(jnp.float32)             # (3, N)
    te = theta + 1e-8
    angle = jnp.sqrt(jnp.sum(te * te, axis=0, keepdims=True))   # (1, N)
    normalized = theta / angle                              # (3, N)
    half = angle * 0.5
    v_cos = jnp.cos(half)                                   # (1, N)
    v_sin = jnp.sin(half)                                   # (1, N)

    # quaternion components kept as separate (1, N) rows (no sublane concat)
    qw = v_cos
    qx = v_sin * normalized[0:1, :]
    qy = v_sin * normalized[1:2, :]
    qz = v_sin * normalized[2:3, :]
    inv_n = jax.lax.rsqrt(qw * qw + qx * qx + qy * qy + qz * qz)
    w = qw * inv_n
    x = qx * inv_n
    y = qy * inv_n
    z = qz * inv_n

    w2, x2, y2, z2 = w * w, x * x, y * y, z * z
    wx, wy, wz = w * x, w * y, w * z
    xy, xz, yz = x * y, x * z, y * z

    # write the nine rotation-matrix rows directly (no concatenate)
    out_ref[0:1, :] = w2 + x2 - y2 - z2
    out_ref[1:2, :] = 2 * xy - 2 * wz
    out_ref[2:3, :] = 2 * wy + 2 * xz
    out_ref[3:4, :] = 2 * wz + 2 * xy
    out_ref[4:5, :] = w2 - x2 + y2 - z2
    out_ref[5:6, :] = 2 * yz - 2 * wx
    out_ref[6:7, :] = 2 * xz - 2 * wy
    out_ref[7:8, :] = 2 * wx + 2 * yz
    out_ref[8:9, :] = w2 - x2 - y2 + z2


def batch_rodrigues(pose):
    """pose: (B, 72) axis-angle. Returns (B, 216) flattened rotation matrices."""
    B = pose.shape[0]
    theta = pose.reshape(-1, 3).astype(jnp.float32)         # (N, 3), N = 24*B
    N = theta.shape[0]
    n_pad = max(128, ((N + 127) // 128) * 128)              # lane-dense
    theta_t = jnp.transpose(theta, (1, 0))                  # (3, N)
    if n_pad != N:
        # zero padding is safe: te = 1e-8 -> identity rotation in pad lanes
        theta_t = jnp.pad(theta_t, ((0, 0), (0, n_pad - N)))

    rot_t = pl.pallas_call(
        _rodrigues_kernel,
        out_shape=jax.ShapeDtypeStruct((9, n_pad), jnp.float32),
        grid=(1,),
        in_specs=[pl.BlockSpec((3, n_pad), lambda i: (0, 0))],
        out_specs=pl.BlockSpec((9, n_pad), lambda i: (0, 0)),
        compiler_params=pltpu.CompilerParams(dimension_semantics=("arbitrary",)),
    )(theta_t)
    rot_t = rot_t[:, :N]
    return jnp.transpose(rot_t, (1, 0)).reshape(B, 24 * 9)


# -----------------------------------------------------------------------------
# Kernel 2: FUSED 1x1-conv IUV head + iuvmap_clean.
#   For each (batch, HW-tile) grid step, block layout is (C, HW_tile) with
#   HW on lanes (multiple of 128).  The Cin=3 contraction is done as three
#   VPU broadcast FMAs per output group (no MXU).  The per-channel argmax
#   one-hot + U/V masking happens on the same VMEM tiles, so the raw conv
#   output never touches HBM.
# -----------------------------------------------------------------------------
def _iuv_fused_kernel(x_ref,
                      wu_ref, wv_ref, wi_ref, wa_ref,
                      bu_ref, bv_ref, bi_ref, ba_ref,
                      ru_ref, rv_ref, ri_ref, ra_ref):
    x = x_ref[...].astype(jnp.float32)                      # (Cin, T)
    cin = x.shape[0]
    t = x.shape[1]
    n_cls = ru_ref.shape[0]

    # hoist the (1, T) input rows once; reused by all four heads
    x_rows = [x[k:k + 1, :] for k in range(cin)]

    def head(w_ref, b_ref):
        w = w_ref[...]                                      # (n_cls, Cin)
        y = b_ref[...] + w[:, 0:1] * x_rows[0]              # (n_cls, T)
        for k in range(1, cin):                             # VPU FMAs, K=Cin
            y = y + w[:, k:k + 1] * x_rows[k]
        return y

    u = head(wu_ref, bu_ref)
    v = head(wv_ref, bv_ref)
    idx = head(wi_ref, bi_ref)
    ann = head(wa_ref, ba_ref)

    cidx = jax.lax.broadcasted_iota(jnp.int32, (n_cls, t), 0)

    def onehot_argmax(z):
        mx = jnp.max(z, axis=0, keepdims=True)              # (1, T)
        cand = jnp.where(z == mx, cidx, n_cls)              # first occurrence
        amin = jnp.min(cand, axis=0, keepdims=True)         # (1, T)
        return (cidx == amin).astype(jnp.float32)

    ri = onehot_argmax(idx)
    ra = onehot_argmax(ann)
    ru_ref[...] = ri * u
    rv_ref[...] = ri * v
    ri_ref[...] = ri
    ra_ref[...] = ra


def _pick_hw_tile(hw, max_tile=8192):
    """Largest multiple-of-128 divisor of hw that is <= max_tile (fallback hw)."""
    if hw <= max_tile:
        return hw
    t = (max_tile // 128) * 128
    while t >= 128:
        if hw % t == 0:
            return t
        t -= 128
    return hw


def iuv_head_clean(image_nchw, w, b, n_cls):
    """Fused 1x1 conv + iuvmap_clean.

    image_nchw: (B, Cin, H, W); w: (Cin, 4*n_cls); b: (1, 4*n_cls).
    Returns cleaned (u, v, index, ann), each (B, n_cls, H, W).
    """
    B, Cin, H, W = image_nchw.shape
    HW = H * W
    x = image_nchw.reshape(B, Cin, HW).astype(jnp.float32)  # NCHW-native, no transpose

    wt = jnp.transpose(w.astype(jnp.float32), (1, 0))       # (4*n_cls, Cin)
    bt = b.astype(jnp.float32).reshape(4 * n_cls, 1)        # (4*n_cls, 1)
    w_groups = [wt[g * n_cls:(g + 1) * n_cls] for g in range(4)]   # (n_cls, Cin)
    b_groups = [bt[g * n_cls:(g + 1) * n_cls] for g in range(4)]   # (n_cls, 1)

    T = _pick_hw_tile(HW)
    grid = (B, HW // T)

    x_spec = pl.BlockSpec((None, Cin, T), lambda bb, tt: (bb, 0, tt))
    w_spec = pl.BlockSpec((n_cls, Cin), lambda bb, tt: (0, 0))
    b_spec = pl.BlockSpec((n_cls, 1), lambda bb, tt: (0, 0))
    o_spec = pl.BlockSpec((None, n_cls, T), lambda bb, tt: (bb, 0, tt))

    outs = pl.pallas_call(
        _iuv_fused_kernel,
        out_shape=[jax.ShapeDtypeStruct((B, n_cls, HW), jnp.float32)] * 4,
        grid=grid,
        in_specs=[x_spec] + [w_spec] * 4 + [b_spec] * 4,
        out_specs=[o_spec] * 4,
        compiler_params=pltpu.CompilerParams(
            dimension_semantics=("parallel", "parallel")),
    )(x, *w_groups, *b_groups)

    return tuple(o.reshape(B, n_cls, H, W) for o in outs)


# -----------------------------------------------------------------------------
# DaNet forward (simplified to the in-module compute path, eval / non-pretrain).
# -----------------------------------------------------------------------------
def init_params(key, c_in=3, n_cls=25):
    k_w, k_b = jax.random.split(key)
    cout = 4 * n_cls
    w = 0.1 * jax.random.normal(k_w, (c_in, cout), dtype=jnp.float32)
    b = 0.01 * jax.random.normal(k_b, (1, cout), dtype=jnp.float32)
    return {"iuv_head_w": w, "iuv_head_b": b, "n_cls": n_cls}


def danet_forward(params, in_dict):
    image = in_dict["img"]                                  # (B, 3, H, W), NCHW
    gt_pose = in_dict.get("opt_pose", None)
    gt_betas = in_dict.get("opt_betas", None)
    target_cam = in_dict.get("target_cam", None)

    return_dict = {"losses": {}, "metrics": {}, "visualization": {}, "prediction": {}}

    # --- target = cat([cam, betas, rotmats(pose)]) --------------------------
    target = None
    if gt_pose is not None:
        gt_rotmat = batch_rodrigues(gt_pose)                # (B, 216) via Pallas
        target = jnp.concatenate([target_cam, gt_betas, gt_rotmat], axis=1)
    return_dict["prediction"]["target"] = target
    # TODO(synk): uv_image_gt scatter via iuv2smpl.verts2uvimg not reproducible
    # without the external SMPL renderer.

    # --- img2iuv stand-in + iuvmap_clean, fused into one Pallas kernel ------
    u_cl, v_cl, i_cl, a_cl = iuv_head_clean(
        image, params["iuv_head_w"], params["iuv_head_b"], params["n_cls"]
    )
    return_dict["visualization"]["iuv_pred"] = [u_cl, v_cl, i_cl, a_cl]

    # --- iuv_map = cat([u, v, index], dim=1) --------------------------------
    iuv_map = jnp.concatenate([u_cl, v_cl, i_cl], axis=1)   # (B, 75, H, W)
    return_dict["prediction"]["iuv_map"] = iuv_map

    # TODO(synk): self.iuv2smpl (SMPL_Regressor) is an external submodule; the
    # SMPL-parameter regression stage is not reproduced here.
    return return_dict


# -----------------------------------------------------------------------------
# Pure-jnp references (correctness checks only).
# -----------------------------------------------------------------------------
def _reference_iuv(image, w, b, n_cls):
    B, Cin, H, W = image.shape
    x = image.reshape(B, Cin, H * W).astype(jnp.float32)
    wt = jnp.transpose(w, (1, 0))                           # (Cout, Cin)
    y = jnp.einsum("oc,bch->boh", wt, x) + b.reshape(1, -1, 1)
    u, v, idx, ann = jnp.split(y, 4, axis=1)

    def clean(z):
        am = jnp.argmax(z, axis=1)
        return jax.nn.one_hot(am, n_cls, axis=1, dtype=jnp.float32)

    ri = clean(idx)
    ra = clean(ann)
    out = (ri * u, ri * v, ri, ra)
    return tuple(o.reshape(B, n_cls, H, W) for o in out)


def _reference_rodrigues(pose):
    theta = pose.reshape(-1, 3).astype(jnp.float32)
    angle = jnp.sqrt(jnp.sum((theta + 1e-8) ** 2, axis=1, keepdims=True))
    normalized = theta / angle
    half = angle * 0.5
    quat = jnp.concatenate([jnp.cos(half), jnp.sin(half) * normalized], axis=1)
    quat = quat / jnp.sqrt(jnp.sum(quat * quat, axis=1, keepdims=True))
    w, x, y, z = quat[:, 0], quat[:, 1], quat[:, 2], quat[:, 3]
    w2, x2, y2, z2 = w * w, x * x, y * y, z * z
    wx, wy, wz = w * x, w * y, w * z
    xy, xz, yz = x * y, x * z, y * z
    rot = jnp.stack(
        [w2 + x2 - y2 - z2, 2 * xy - 2 * wz, 2 * wy + 2 * xz,
         2 * wz + 2 * xy, w2 - x2 + y2 - z2, 2 * yz - 2 * wx,
         2 * xz - 2 * wy, 2 * wx + 2 * yz, w2 - x2 - y2 + z2], axis=1)
    return rot.reshape(pose.shape[0], 24 * 9)


if __name__ == "__main__":
    key = jax.random.PRNGKey(0)
    k_img, k_pose, k_betas, k_cam, k_param = jax.random.split(key, 5)

    B, Cin, H, W = 2, 3, 16, 16
    img = jax.random.normal(k_img, (B, Cin, H, W), dtype=jnp.float32)
    opt_pose = 0.2 * jax.random.normal(k_pose, (B, 72), dtype=jnp.float32)
    opt_betas = jax.random.normal(k_betas, (B, 10), dtype=jnp.float32)
    target_cam = jax.random.normal(k_cam, (B, 3), dtype=jnp.float32)

    params = init_params(k_param, c_in=Cin, n_cls=25)
    in_dict = {
        "img": img,
        "opt_pose": opt_pose,
        "opt_betas": opt_betas,
        "target_cam": target_cam,
        "pretrain_mode": False,
        "vis_on": False,
        "dataset_name": "",
    }

    out = danet_forward(params, in_dict)
    jax.block_until_ready(out["prediction"]["iuv_map"])
    jax.block_until_ready(out["prediction"]["target"])

    # --- sanity / correctness checks ---------------------------------------
    assert out["prediction"]["target"].shape == (B, 3 + 10 + 24 * 9)
    assert out["prediction"]["iuv_map"].shape == (B, 75, H, W)

    # each spatial location of the cleaned index map is one-hot over 25 classes
    idx_sum = jnp.sum(out["visualization"]["iuv_pred"][2], axis=1)
    assert bool(jnp.allclose(idx_sum, 1.0))

    # fused head+clean matches the unfused pure-jnp reference
    ref_iuv = _reference_iuv(img, params["iuv_head_w"], params["iuv_head_b"],
                             params["n_cls"])
    for got, ref in zip(out["visualization"]["iuv_pred"], ref_iuv):
        assert bool(jnp.allclose(got, ref, atol=1e-4, rtol=1e-4))

    # Pallas Rodrigues matches pure-jnp reference
    rot_ref = _reference_rodrigues(opt_pose)
    rot_got = out["prediction"]["target"][:, 13:]
    assert bool(jnp.allclose(rot_got, rot_ref, atol=1e-5, rtol=1e-5))

    print("KERNEL_OK")
</pallas_src>

<mosaic_0001>
module attributes {stable_mosaic.version = 11 : i64} {
  func.func @_rodrigues_kernel(%arg0: i32, %arg1: memref<3x128xf32, #tpu.memory_space<vmem>>, %arg2: memref<9x128xf32, #tpu.memory_space<vmem>>) attributes {dimension_semantics = [#tpu.dimension_semantics<arbitrary>], iteration_bounds = array<i64: 1>, scalar_prefetch = 0 : i64, scratch_operands = 0 : i64, tpu.core_type = #tpu.core_type<tc>, window_params = [{pipeline_mode = #tpu.pipeline_mode<synchronous>, transform_indices = @transform_0, window_bounds = array<i64: 3, 128>}, {pipeline_mode = #tpu.pipeline_mode<synchronous>, transform_indices = @transform_1, window_bounds = array<i64: 9, 128>}]} {
    %c0 = arith.constant 0 : index
    %c0_0 = arith.constant 0 : index
    %0 = vector.load %arg1[%c0, %c0_0] : memref<3x128xf32, #tpu.memory_space<vmem>>, vector<3x128xf32>
    %cst = arith.constant 9.99999993E-9 : f32
    %1 = vector.broadcast %cst : f32 to vector<3x128xf32>
    %2 = arith.addf %0, %1 : vector<3x128xf32>
    %3 = arith.mulf %2, %2 : vector<3x128xf32>
    %cst_1 = arith.constant dense<0.000000e+00> : vector<128xf32>
    %4 = vector.multi_reduction <add>, %3, %cst_1 [0] : vector<3x128xf32> to vector<128xf32>
    %5 = vector.shape_cast %4 : vector<128xf32> to vector<1x128xf32>
    %6 = math.sqrt %5 : vector<1x128xf32>
    %7 = vector.broadcast %6 : vector<1x128xf32> to vector<3x128xf32>
    %8 = arith.divf %0, %7 : vector<3x128xf32>
    %cst_2 = arith.constant 5.000000e-01 : f32
    %9 = vector.broadcast %cst_2 : f32 to vector<1x128xf32>
    %10 = arith.mulf %6, %9 : vector<1x128xf32>
    %11 = math.cos %10 : vector<1x128xf32>
    %12 = math.sin %10 : vector<1x128xf32>
    %13 = vector.extract_strided_slice %8 {offsets = [0, 0], sizes = [1, 128], strides = [1, 1]} : vector<3x128xf32> to vector<1x128xf32>
    %14 = arith.mulf %12, %13 : vector<1x128xf32>
    %15 = vector.extract_strided_slice %8 {offsets = [1, 0], sizes = [1, 128], strides = [1, 1]} : vector<3x128xf32> to vector<1x128xf32>
    %16 = arith.mulf %12, %15 : vector<1x128xf32>
    %17 = vector.extract_strided_slice %8 {offsets = [2, 0], sizes = [1, 128], strides = [1, 1]} : vector<3x128xf32> to vector<1x128xf32>
    %18 = arith.mulf %12, %17 : vector<1x128xf32>
    %19 = arith.mulf %11, %11 : vector<1x128xf32>
    %20 = arith.mulf %14, %14 : vector<1x128xf32>
    %21 = arith.addf %19, %20 : vector<1x128xf32>
    %22 = arith.mulf %16, %16 : vector<1x128xf32>
    %23 = arith.addf %21, %22 : vector<1x128xf32>
    %24 = arith.mulf %18, %18 : vector<1x128xf32>
    %25 = arith.addf %23, %24 : vector<1x128xf32>
    %26 = math.rsqrt %25 : vector<1x128xf32>
    %27 = arith.mulf %11, %26 : vector<1x128xf32>
    %28 = arith.mulf %14, %26 : vector<1x128xf32>
    %29 = arith.mulf %16, %26 : vector<1x128xf32>
    %30 = arith.mulf %18, %26 : vector<1x128xf32>
    %31 = arith.mulf %27, %27 : vector<1x128xf32>
    %32 = arith.mulf %28, %28 : vector<1x128xf32>
    %33 = arith.mulf %29, %29 : vector<1x128xf32>
    %34 = arith.mulf %30, %30 : vector<1x128xf32>
    %35 = arith.mulf %27, %28 : vector<1x128xf32>
    %36 = arith.mulf %27, %29 : vector<1x128xf32>
    %37 = arith.mulf %27, %30 : vector<1x128xf32>
    %38 = arith.mulf %28, %29 : vector<1x128xf32>
    %39 = arith.mulf %28, %30 : vector<1x128xf32>
    %40 = arith.mulf %29, %30 : vector<1x128xf32>
    %41 = arith.addf %31, %32 : vector<1x128xf32>
    %42 = arith.subf %41, %33 : vector<1x128xf32>
    %43 = arith.subf %42, %34 : vector<1x128xf32>
    %c0_3 = arith.constant 0 : index
    %c0_4 = arith.constant 0 : index
    %44 = vector.load %arg2[%c0_3, %c0_4] : memref<9x128xf32, #tpu.memory_space<vmem>>, vector<1x128xf32>
    tpu.vector_store %arg2[%c0_3, %c0_4], %43 {strides = array<i32>} : memref<9x128xf32, #tpu.memory_space<vmem>>, vector<1x128xf32>,
    %cst_5 = arith.constant 2.000000e+00 : f32
    %45 = vector.broadcast %cst_5 : f32 to vector<1x128xf32>
    %46 = arith.mulf %45, %38 : vector<1x128xf32>
    %cst_6 = arith.constant 2.000000e+00 : f32
    %47 = vector.broadcast %cst_6 : f32 to vector<1x128xf32>
    %48 = arith.mulf %47, %37 : vector<1x128xf32>
    %49 = arith.subf %46, %48 : vector<1x128xf32>
    %c1 = arith.constant 1 : index
    %c0_7 = arith.constant 0 : index
    %50 = vector.load %arg2[%c1, %c0_7] : memref<9x128xf32, #tpu.memory_space<vmem>>, vector<1x128xf32>
    tpu.vector_store %arg2[%c1, %c0_7], %49 {strides = array<i32>} : memref<9x128xf32, #tpu.memory_space<vmem>>, vector<1x128xf32>,
    %cst_8 = arith.constant 2.000000e+00 : f32
    %51 = vector.broadcast %cst_8 : f32 to vector<1x128xf32>
    %52 = arith.mulf %51, %36 : vector<1x128xf32>
    %cst_9 = arith.constant 2.000000e+00 : f32
    %53 = vector.broadcast %cst_9 : f32 to vector<1x128xf32>
    %54 = arith.mulf %53, %39 : vector<1x128xf32>
    %55 = arith.addf %52, %54 : vector<1x128xf32>
    %c2 = arith.constant 2 : index
    %c0_10 = arith.constant 0 : index
    %56 = vector.load %arg2[%c2, %c0_10] : memref<9x128xf32, #tpu.memory_space<vmem>>, vector<1x128xf32>
    tpu.vector_store %arg2[%c2, %c0_10], %55 {strides = array<i32>} : memref<9x128xf32, #tpu.memory_space<vmem>>, vector<1x128xf32>,
    %cst_11 = arith.constant 2.000000e+00 : f32
    %57 = vector.broadcast %cst_11 : f32 to vector<1x128xf32>
    %58 = arith.mulf %57, %37 : vector<1x128xf32>
    %cst_12 = arith.constant 2.000000e+00 : f32
    %59 = vector.broadcast %cst_12 : f32 to vector<1x128xf32>
    %60 = arith.mulf %59, %38 : vector<1x128xf32>
    %61 = arith.addf %58, %60 : vector<1x128xf32>
    %c3 = arith.constant 3 : index
    %c0_13 = arith.constant 0 : index
    %62 = vector.load %arg2[%c3, %c0_13] : memref<9x128xf32, #tpu.memory_space<vmem>>, vector<1x128xf32>
    tpu.vector_store %arg2[%c3, %c0_13], %61 {strides = array<i32>} : memref<9x128xf32, #tpu.memory_space<vmem>>, vector<1x128xf32>,
    %63 = arith.subf %31, %32 : vector<1x128xf32>
    %64 = arith.addf %63, %33 : vector<1x128xf32>
    %65 = arith.subf %64, %34 : vector<1x128xf32>
    %c4 = arith.constant 4 : index
    %c0_14 = arith.constant 0 : index
    %66 = vector.load %arg2[%c4, %c0_14] : memref<9x128xf32, #tpu.memory_space<vmem>>, vector<1x128xf32>
    tpu.vector_store %arg2[%c4, %c0_14], %65 {strides = array<i32>} : memref<9x128xf32, #tpu.memory_space<vmem>>, vector<1x128xf32>,
    %cst_15 = arith.constant 2.000000e+00 : f32
    %67 = vector.broadcast %cst_15 : f32 to vector<1x128xf32>
    %68 = arith.mulf %67, %40 : vector<1x128xf32>
    %cst_16 = arith.constant 2.000000e+00 : f32
    %69 = vector.broadcast %cst_16 : f32 to vector<1x128xf32>
    %70 = arith.mulf %69, %35 : vector<1x128xf32>
    %71 = arith.subf %68, %70 : vector<1x128xf32>
    %c5 = arith.constant 5 : index
    %c0_17 = arith.constant 0 : index
    %72 = vector.load %arg2[%c5, %c0_17] : memref<9x128xf32, #tpu.memory_space<vmem>>, vector<1x128xf32>
    tpu.vector_store %arg2[%c5, %c0_17], %71 {strides = array<i32>} : memref<9x128xf32, #tpu.memory_space<vmem>>, vector<1x128xf32>,
    %cst_18 = arith.constant 2.000000e+00 : f32
    %73 = vector.broadcast %cst_18 : f32 to vector<1x128xf32>
    %74 = arith.mulf %73, %39 : vector<1x128xf32>
    %cst_19 = arith.constant 2.000000e+00 : f32
    %75 = vector.broadcast %cst_19 : f32 to vector<1x128xf32>
    %76 = arith.mulf %75, %36 : vector<1x128xf32>
    %77 = arith.subf %74, %76 : vector<1x128xf32>
    %c6 = arith.constant 6 : index
    %c0_20 = arith.constant 0 : index
    %78 = vector.load %arg2[%c6, %c0_20] : memref<9x128xf32, #tpu.memory_space<vmem>>, vector<1x128xf32>
    tpu.vector_store %arg2[%c6, %c0_20], %77 {strides = array<i32>} : memref<9x128xf32, #tpu.memory_space<vmem>>, vector<1x128xf32>,
    %cst_21 = arith.constant 2.000000e+00 : f32
    %79 = vector.broadcast %cst_21 : f32 to vector<1x128xf32>
    %80 = arith.mulf %79, %35 : vector<1x128xf32>
    %cst_22 = arith.constant 2.000000e+00 : f32
    %81 = vector.broadcast %cst_22 : f32 to vector<1x128xf32>
    %82 = arith.mulf %81, %40 : vector<1x128xf32>
    %83 = arith.addf %80, %82 : vector<1x128xf32>
    %c7 = arith.constant 7 : index
    %c0_23 = arith.constant 0 : index
    %84 = vector.load %arg2[%c7, %c0_23] : memref<9x128xf32, #tpu.memory_space<vmem>>, vector<1x128xf32>
    tpu.vector_store %arg2[%c7, %c0_23], %83 {strides = array<i32>} : memref<9x128xf32, #tpu.memory_space<vmem>>, vector<1x128xf32>,
    %85 = arith.subf %31, %32 : vector<1x128xf32>
    %86 = arith.subf %85, %33 : vector<1x128xf32>
    %87 = arith.addf %86, %34 : vector<1x128xf32>
    %c8 = arith.constant 8 : index
    %c0_24 = arith.constant 0 : index
    %88 = vector.load %arg2[%c8, %c0_24] : memref<9x128xf32, #tpu.memory_space<vmem>>, vector<1x128xf32>
    tpu.vector_store %arg2[%c8, %c0_24], %87 {strides = array<i32>} : memref<9x128xf32, #tpu.memory_space<vmem>>, vector<1x128xf32>,
    return
  }
  func.func @transform_0(%arg0: i32) -> (i32, i32) {
    %c0_i32 = arith.constant 0 : i32
    %c0_i32_0 = arith.constant 0 : i32
    %c0_i32_1 = arith.constant 0 : i32
    return %c0_i32, %c0_i32_0 : i32, i32
  }
  func.func @transform_1(%arg0: i32) -> (i32, i32) {
    %c0_i32 = arith.constant 0 : i32
    %c0_i32_0 = arith.constant 0 : i32
    %c0_i32_1 = arith.constant 0 : i32
    return %c0_i32, %c0_i32_0 : i32, i32
  }
}

</mosaic_0001>

<bundles_post_ra>
// kernel: tpu_custom_call.1
= control target key start
LH: loop header
LB: loop body
LE: loop exit
PB: predicated region body
PF: predicated region fallthrough
CT: control target
= control target key end

     0   :  { %6 = vsyncpa [#allocation3], 0  ;;  %s494_s0 = inlined_call_operand.hbm [shape: f32[3,128], index: 0, kind: input, shape index: {}]   ;;  %s495_s1 = inlined_call_operand.hbm [shape: f32[9,128], index: 1, kind: output, shape index: {}]  }
   0x1   :  { %7 = vsyncpa [#allocation4], 0  ;;  %s426_s6 = smov [#allocation2]   ;;  %s378_s10 = scalar_lea.hbm %s494_s0, 64 }
   0x2   :  { %s14_s7 = sshll.u32 %s426_s6, 4  ;;  %p379_p0 = scmp.ne.s32.totalorder %s494_s0, %s378_s10  ;;  %s15_s7 = int_to_ptr.vmem [resolvable:$true] %s14_s7 }
   0x3   :  { %p382_p1 = scmp.lt.u32.totalorder %s378_s10, %s494_s0 }
   0x5   :  { %p384_p2 = pnand %p382_p1, %p379_p0 }
   0x7   :  { %387 = shalt.err (!%p384_p2)
}
   0x8   :  { %s388_s15 = scalar_lea.vmem %s15_s7, 64  ;;  %p393_p4 = scmp.lt.s32.totalorder %s15_s7, %s15_s7 }
   0x9   :  { %p389_p3 = scmp.ne.s32.totalorder %s15_s7, %s388_s15  ;;  %p394_p5 = scmp.lt.s32.totalorder %s388_s15, %s388_s15 }
   0xb   :  { %p395_p6 = por %p394_p5, %p393_p4 }
   0xd   :  { %p396_p7 = pnand %p395_p6, %p389_p3 }
   0xf   :  { %399 = shalt.err (!%p396_p7)
}
  0x10   :  { %17 = dma.hbm_to_vmem [thread:$0]  %s494_s0, 64, %s15_s7, [#allocation3]  }
  0x11   :  { %422 = dma.done.wait [#allocation3], 64  }
  0x12   :  { %423 = vsyncadd [#allocation3], 4294967232  ;;  %v21_v0 = vld [vmem:[#allocation2] sm:$0x7]  ;;  %vm24_vm0 = vcmask 1042432   ;;  %s433_s0 = smov [#allocation5]  }
  0x13   :  { %v22_v1 = vadd.f32 1e-08, %v21_v0  ;;  %v427_v29 = vmov 683565275   ;;  %v428_v31 = vmov 2475754826  }
  0x14   :  { %v429_v33 = vmov 2131351028   ;;  %v430_v35 = vmov 2102212464   ;;  %v431_v37 = vmov 920167782  }
  0x15   :  { %v23_v2 = vmul.f32 %v22_v1, %v22_v1  ;;  %v432_v44 = vmov 1326507024   ;;  %s334_s18 = sshll.u32 %s433_s0, 4  ;;  %s335_s18 = int_to_ptr.vmem [resolvable:$true] %s334_s18 }
  0x16   :  { %s400_s19 = scalar_lea.vmem %s335_s18, 256  ;;  %p405_p9 = scmp.lt.s32.totalorder %s335_s18, %s335_s18 }
  0x17   :  { %v25_v3 = vsel %vm24_vm0, %v23_v2, 0.0  ;;  %p401_p8 = scmp.ne.s32.totalorder %s335_s18, %s400_s19  ;;  %p406_p10 = scmp.lt.s32.totalorder %s400_s19, %s400_s19 }
  0x18   :  { %v26_v4 = vrot.slane %v25_v3, 4 }
  0x19   :  { %p407_p11 = por %p406_p10, %p405_p9 }
  0x1a   :  { %v27_v5 = vadd.f32 %v26_v4, %v25_v3 }
  0x1b   :  { %p408_p12 = pnand %p407_p11, %p401_p8 }
  0x1c   :  { %v28_v6 = vrot.slane %v27_v5, 2 }
  0x1e   :  { %v29_v7 = vadd.f32 %v28_v6, %v27_v5 }
  0x20   :  { %v30_v8 = vrot.slane %v29_v7, 1 }
  0x22   :  { %v31_v9 = vadd.f32 %v30_v8, %v29_v7 }
  0x24   :  { %368 = vrsqrt.f32 %v31_v9  ;;  %vm34_vm1 = vcmp.eq.f32.partialorder %v31_v9, inf  ;;  %v37_v11 = vand.u32 2147483648, %v31_v9  ;;  %vm36_vm2 = vcmp.eq.f32.partialorder %v31_v9, 0.0 }
  0x2e   :  { %v369_v10 = vpop.eup %368 }
  0x2f   :  { %v33_v12 = vmul.f32 %v369_v10, %v31_v9 }
  0x31   :  { %v35_v13 = vsel %vm34_vm1, %v31_v9, %v33_v12 }
  0x32   :  { %v38_v14 = vsel %vm36_vm2, %v37_v11, %v35_v13 }
  0x33   :  { %370 = vrcp.f32 %v38_v14  ;;  %v458_v15 = vmul.f32 0.5, %v38_v14 }
  0x35   :  { %v45_v16 = vand.u32 2139095040, %v458_v15  ;;  %v42_v18 = vand.u32 2147483647, %v458_v15  ;;  %vm44_vm10 = vcmp.lt.s32.totalorder %v458_v15, 0  ;;  %vm134_vm2 = vweird.f32 %v458_v15 }
  0x37   :  { %v46_v17 = vshrl.u32 %v45_v16, 23  ;;  %v49_v21 = vand.u32 8388607, %v42_v18  ;;  %vm43_vm11 = vcmp.le.f32.partialorder %v42_v18, 0.7853982 }
  0x39   :  { %v346_v19 = vadd.s32 4294967169, %v46_v17  ;;  %v50_v26 = vor.u32 8388608, %v49_v21 }
  0x3b   :  { %v52_v20 = vadd.s32 1, %v346_v19  ;;  %v90_v46 = vshll.u32 %v50_v26, 8 }
  0x3d   :  { %v371_v22 = vpop.eup %370  ;;  %vm53_vm3 = vcmp.gt.s32.totalorder %v52_v20, 0 }
  0x3e   :  { %v464_v23 = vmul.f32 %v371_v22, %v21_v0  ;;  %v54_v24 = vsel %vm53_vm3, %v52_v20, 0 }
  0x3f   :  { %v56_v25 = vand.u32 31, %v54_v24  ;;  %v55_v27 = vshrl.u32 %v54_v24, 5 }
  0x41   :  { %v57_v28 = vsub.s32 32, %v56_v25  ;;  %v59_v30 = vshll.u32 %v427_v29, %v56_v25  ;;  %v62_v32 = vshll.u32 %v428_v31, %v56_v25  ;;  %v65_v34 = vshll.u32 %v429_v33, %v56_v25 }
  0x42   :  { %v68_v36 = vshll.u32 %v430_v35, %v56_v25  ;;  %v71_v38 = vshll.u32 %v431_v37, %v56_v25  ;;  %vm74_vm4 = vcmp.lt.s32.totalorder %v55_v27, 1  ;;  %vm77_vm5 = vcmp.lt.s32.totalorder %v55_v27, 4 }
  0x43   :  { %v58_v39 = vshrl.u32 %v427_v29, %v57_v28  ;;  %v60_v40 = vshrl.u32 %v428_v31, %v57_v28  ;;  %v63_v41 = vshrl.u32 %v429_v33, %v57_v28  ;;  %v66_v42 = vshrl.u32 %v430_v35, %v57_v28 }
  0x44   :  { %v69_v43 = vshrl.u32 %v431_v37, %v57_v28  ;;  %v72_v45 = vshrl.u32 %v432_v44, %v57_v28  ;;  %vm75_vm6 = vcmp.lt.s32.totalorder %v55_v27, 2  ;;  %vm76_vm7 = vcmp.lt.s32.totalorder %v55_v27, 3 }
  0x45   :  { %v61_v47 = vor.u32 %v60_v40, %v59_v30  ;;  %v64_v48 = vor.u32 %v63_v41, %v62_v32  ;;  %v67_v49 = vor.u32 %v66_v42, %v65_v34 }
  0x46   :  { %v70_v50 = vor.u32 %v69_v43, %v68_v36  ;;  %v73_v51 = vor.u32 %v72_v45, %v71_v38 }
  0x47   :  { %v78_v52 = vsel %vm74_vm4, %v58_v39, %v61_v47  ;;  %v79_v53 = vsel %vm77_vm5, %v67_v49, 2102212464  ;;  %v82_v54 = vsel %vm74_vm4, %v61_v47, %v64_v48  ;;  %v86_v55 = vsel %vm74_vm4, %v64_v48, %v67_v49 }
  0x48   :  { %v80_v56 = vsel %vm76_vm7, %v64_v48, %v79_v53  ;;  %v83_v57 = vsel %vm77_vm5, %v70_v50, 920167782  ;;  %v87_v58 = vsel %vm77_vm5, %v73_v51, 1326507024 }
  0x49   :  { %v84_v59 = vsel %vm76_vm7, %v67_v49, %v83_v57  ;;  %v88_v60 = vsel %vm76_vm7, %v70_v50, %v87_v58  ;;  %v81_v61 = vsel %vm75_vm6, %v78_v52, %v80_v56 }
  0x4a   :  { %v85_v62 = vsel %vm75_vm6, %v82_v54, %v84_v59  ;;  %v89_v63 = vsel %vm75_vm6, %v86_v55, %v88_v60  ;;  %v97_v4 = vmul.u32 %v90_v46, %v81_v61 }
  0x4b   :  { %v466_v0 = vmul.u32.u64.low %v90_v46, %v89_v63  ;;  %v467_v1 = vmul.u32.u64.high %v90_v46, %v89_v63, %v466_v0  ;;  %v469_v2 = vmul.u32.u64.low %v90_v46, %v85_v62  ;;  %v470_v3 = vmul.u32.u64.high %v90_v46, %v85_v62, %v469_v2 }
  0x4d   :  { %vm99_vm8 = vc.u32 %v467_v1, %v469_v2  ;;  %v100_v5 = vadd.s32 1, %v470_v3  ;;  %v98_v17 = vadd.s32 %v469_v2, %v467_v1 }
  0x4f   :  { %v101_v6 = vsel %vm99_vm8, %v100_v5, %v470_v3 }
  0x50   :  { %v102_v7 = vadd.s32 %v101_v6, %v97_v4 }
  0x52   :  { %v103_v8 = vadd.s32 536870912, %v102_v7 }
  0x54   :  { %v104_v9 = vshrl.u32 %v103_v8, 30 }
  0x56   :  { %v105_v10 = vshll.u32 %v104_v9, 30  ;;  %v128_v31 = vsub.s32 4, %v104_v9 }
  0x58   :  { %v106_v11 = vsub.s32 %v102_v7, %v105_v10  ;;  %v129_v34 = vsel %vm44_vm10, %v128_v31, %v104_v9 }
  0x59   :  { %v131_v37 = vsel %vm43_vm11, 0, %v129_v34 }
  0x5a   :  { %v108_v12 = vsub.s32 0, %v106_v11  ;;  %v238_v38 = vadd.s32 3, %v131_v37  ;;  %v135_v39 = vand.u32 3, %v131_v37 }
  0x5c   :  { %v347_v13 = vmin.u32 %v108_v12, %v106_v11  ;;  %v239_v40 = vand.u32 3, %v238_v38  ;;  %vm140_vm12 = vcmp.eq.s32.totalorder %v135_v39, 2  ;;  %vm137_vm14 = vcmp.eq.s32.totalorder %v135_v39, 0 }
  0x5d   :  { %vm136_vm0 = vcmp.lt.s32.totalorder %v135_v39, 2 }
  0x5e   :  { %v110_v14 = vclz %v347_v13  ;;  %vm244_vm13 = vcmp.eq.s32.totalorder %v239_v40, 2  ;;  %vm241_vm15 = vcmp.eq.s32.totalorder %v239_v40, 0  ;;  %vm240_vm1 = vcmp.lt.s32.totalorder %v239_v40, 2 }
  0x60   :  { %v348_v16 = vadd.s32 4294967294, %v110_v14 }
  0x62   :  { %vm349_vm9 = vcmp.lt.s32.totalorder %v348_v16, 0 }
  0x63   :  { %v113_v19 = vsel %vm349_vm9, 0, %v348_v16 }
  0x64   :  { %v114_v20 = vsub.s32 32, %v113_v19  ;;  %v115_v21 = vshll.u32 %v106_v11, %v113_v19  ;;  %v118_v22 = vsub.s32 4294967266, %v113_v19 }
  0x66   :  { %v116_v24 = vshrl.u32 %v98_v17, %v114_v20  ;;  %v119_v25 = vadd.s32 127, %v118_v22 }
  0x68   :  { %v117_v26 = vor.u32 %v116_v24, %v115_v21  ;;  %v120_v27 = vshll.u32 %v119_v25, 23 }
  0x6a   :  { %v121_v28 = vor.u32 4788187, %v120_v27  ;;  %v124_v29 = vcvt.s32.f32 %v117_v26 }
  0x6c   :  { %v122_v30 = vand.u32 2147483647, %v121_v28 }
  0x6e   :  { %v125_v32 = vmul.f32 %v124_v29, %v122_v30 }
  0x70   :  { %v126_v33 = vxor.u32 2147483648, %v125_v32 }
  0x72   :  { %v127_v35 = vsel %vm44_vm10, %v126_v33, %v125_v32 }
  0x73   :  { %v130_v36 = vsel %vm43_vm11, %v458_v15, %v127_v35 }
  0x74   :  { %372 = vcosq.f32 %v130_v36 }
  0x75   :  { %374 = vsinq.f32 %v130_v36 }
  0x7e   :  { %v373_v41 = vpop.eup %372 }
  0x7f   :  { %v375_v42 = vpop.eup %374  ;;  %v141_v43 = vxor.u32 2147483648, %v373_v41 }
  0x80   :  { %v138_v18 = vxor.u32 2147483648, %v375_v42 }
  0x81   :  { %v142_v44 = vsel %vm140_vm12, %v141_v43, %v375_v42  ;;  %v246_v45 = vsel %vm244_vm13, %v141_v43, %v375_v42 }
  0x82   :  { %v139_v46 = vsel %vm137_vm14, %v373_v41, %v138_v18  ;;  %v243_v47 = vsel %vm241_vm15, %v373_v41, %v138_v18 }
  0x83   :  { %v143_v48 = vsel %vm136_vm0, %v139_v46, %v142_v44  ;;  %v247_v49 = vsel %vm240_vm1, %v243_v47, %v246_v45 }
  0x84   :  { %v144_v50 = vsel %vm134_vm2, nan, %v143_v48  ;;  %v248_v51 = vsel %vm134_vm2, nan, %v247_v49 }
  0x85   :  { %v249_v52 = vmul.f32 %v248_v51, %v464_v23  ;;  %v250_v53 = vmul.f32 %v144_v50, %v144_v50 }
  0x87   :  { %v251_v54 = vmul.f32 %v249_v52, %v249_v52 }
  0x89   :  { %v252_v55 = vadd.f32 %v251_v54, %v250_v53  ;;  %v254_v56 = vrot.slane %v251_v54, 1  ;;  %v257_v57 = vrot.slane %v251_v54, 2 }
  0x8b   :  { %v256_v58 = vadd.f32 %v254_v56, %v252_v55 }
  0x8d   :  { %v259_v59 = vadd.f32 %v257_v57, %v256_v58 }
  0x8f   :  { %376 = vrsqrt.f32 %v259_v59 }
  0x99   :  { %v377_v60 = vpop.eup %376 }
  0x9a   :  { %v261_v15 = vmul.f32 %v377_v60, %v144_v50  ;;  %v262_v61 = vmul.f32 %v377_v60, %v249_v52  ;;  %v264_v62 = vrot.slane %v377_v60, 7  ;;  %v267_v63 = vrot.slane %v377_v60, 6 }
  0x9c   :  { %v266_v0 = vmul.f32 %v264_v62, %v249_v52  ;;  %v269_v1 = vmul.f32 %v267_v63, %v249_v52  ;;  %v270_v2 = vmul.f32 %v261_v15, %v261_v15  ;;  %v271_v3 = vmul.f32 %v262_v61, %v262_v61 }
  0x9d   :  { %v274_v4 = vmul.f32 %v262_v61, %v261_v15 }
  0x9e   :  { %v272_v5 = vmul.f32 %v266_v0, %v266_v0  ;;  %v273_v23 = vmul.f32 %v269_v1, %v269_v1  ;;  %v288_v6 = vadd.f32 %v271_v3, %v270_v2  ;;  %v276_v7 = vrot.slane %v266_v0, 1 }
  0x9f   :  { %v280_v8 = vrot.slane %v269_v1, 2  ;;  %v308_v9 = vsub.f32 %v270_v2, %v271_v3  ;;  %v285_v10 = vrot.slane %v269_v1, 1  ;;  %v313_v11 = vmul.f32 2.0, %v274_v4 }
  0xa0   :  { %v290_v12 = vrot.slane %v272_v5, 1  ;;  %v294_v13 = vrot.slane %v273_v23, 2  ;;  %v283_v14 = vmul.f32 %v276_v7, %v262_v61  ;;  %v278_v16 = vmul.f32 %v276_v7, %v261_v15 }
  0xa1   :  { %v282_v17 = vmul.f32 %v280_v8, %v261_v15  ;;  %v284_v19 = vmul.f32 %v280_v8, %v262_v61  ;;  %v287_v20 = vmul.f32 %v285_v10, %v266_v0  ;;  %v315_v21 = vrot.slane %v313_v11, 7 }
  0xa2   :  { %v292_v22 = vsub.f32 %v288_v6, %v290_v12  ;;  %v298_v24 = vmul.f32 2.0, %v283_v14  ;;  %v302_v25 = vmul.f32 2.0, %v278_v16  ;;  %v309_v26 = vadd.f32 %v308_v9, %v290_v12 }
  0xa3   :  { %v299_v27 = vmul.f32 2.0, %v282_v17  ;;  %v303_v28 = vmul.f32 2.0, %v284_v19  ;;  %v312_v29 = vmul.f32 2.0, %v287_v20  ;;  %v326_v30 = vsub.f32 %v308_v9, %v290_v12 }
  0xa4   :  { %v296_v31 = vsub.f32 %v292_v22, %v294_v13  ;;  %v310_v32 = vsub.f32 %v309_v26, %v294_v13 }
  0xa5   :  { %v300_v33 = vsub.f32 %v298_v24, %v299_v27  ;;  %v304_v34 = vadd.f32 %v303_v28, %v302_v25  ;;  %v306_v35 = vadd.f32 %v299_v27, %v298_v24  ;;  %v317_v36 = vsub.f32 %v312_v29, %v315_v21 }
  0xa6   :  { %297 = vst [vmem:[#allocation5] sm:$0x1] %v296_v31  ;;  %311 = vst [vmem:[#allocation5 + $0x4] sm:$0x1] %v310_v32  ;;  %v319_v37 = vsub.f32 %v303_v28, %v302_v25  ;;  %v322_v38 = vrot.slane %v312_v29, 1  ;;  %v327_v39 = vadd.f32 %v326_v30, %v294_v13 }
  0xa7   :  { %301 = vst [vmem:[#allocation5 + $0x1] sm:$0x1] %v300_v33  ;;  %305 = vst [vmem:[#allocation5 + $0x2] sm:$0x1] %v304_v34 }
  0xa8   :  { %307 = vst [vmem:[#allocation5 + $0x3] sm:$0x1] %v306_v35  ;;  %318 = vst [vmem:[#allocation5 + $0x4] sm:$0x2] %v317_v36  ;;  %v324_v40 = vadd.f32 %v322_v38, %v313_v11 }
  0xa9   :  { %320 = vst [vmem:[#allocation5 + $0x6] sm:$0x1] %v319_v37  ;;  %328 = vst [vmem:[#allocation5 + $0x8] sm:$0x1] %v327_v39 }
  0xaa   :  { %325 = vst [vmem:[#allocation5 + $0x7] sm:$0x1] %v324_v40 }
  0xab   :  { %411 = shalt.err (!%p408_p12)
}
  0xac   :  { %s412_s22 = scalar_lea.hbm %s495_s1, 256 }
  0xad   :  { %p413_p13 = scmp.ne.s32.totalorder %s495_s1, %s412_s22  ;;  %p416_p0 = scmp.lt.u32.totalorder %s412_s22, %s495_s1 }
  0xaf   :  { %p418_p1 = pnand %p416_p0, %p413_p13 }
  0xb1   :  { %421 = shalt.err (!%p418_p1)
}
  0xb2   :  { %s434_s27 = smov 128   ;;  %s435_s28 = smov 8  }
  0xb3   :  { %340 = dma.vmem_to_hbm [thread:$0]  %s335_s18, 256, %s495_s1, [#allocation4], %s434_s27, %s434_s27, %s435_s28  }
  0xb4   :  { %424 = dma.done.wait [#allocation4], 256  }
  0xb5   :  { %425 = vsyncadd [#allocation4], 4294967040 }
  0xb6   :  { %344 = vsyncpa [#allocation3], 1 }
  0xb7   :  { %345 = vsyncpa [#allocation4], 1 }

</bundles_post_ra>
